<compile_context>
chip_gen: v6e
topology: v6e:2x2x1
jax: 0.10.0
libtpu: 0.0.40
codegen_flags: <defaults>
</compile_context>

<pallas_src>
import math

import jax
import jax.numpy as jnp
from jax.experimental import pallas as pl
from jax.experimental.pallas import tpu as pltpu


def _round_up(x, m):
    return ((x + m - 1) // m) * m


def _sublane(dtype):
    # rows packed per sublane: f32 -> 8, bf16 -> 16, int8/fp8 -> 32
    return {4: 8, 2: 16, 1: 32}.get(jnp.dtype(dtype).itemsize, 8)


def _vmem_capacity_bytes():
    try:
        cap = getattr(pltpu.get_tpu_info(), "vmem_capacity_bytes", None)
        if cap:
            return int(cap)
    except Exception:
        pass
    # Conservative fallback: v7x physical per-TC VMEM; safe on every gen.
    return 64 * 1024 * 1024


def _make_kernel(has_bias, use_scratch, compute_dtype):
    """Output-stationary (i, j, k) matmul tile kernel."""

    def body(x_ref, w_ref, b_ref, o_ref, acc_ref):
        k = pl.program_id(2)
        xv = x_ref[...]
        wv = w_ref[...]
        if compute_dtype is not None:
            xv = xv.astype(compute_dtype)
            wv = wv.astype(compute_dtype)
        part = jnp.dot(xv, wv, preferred_element_type=jnp.float32)
        # f32 outputs: accumulate straight into the VMEM-resident output block
        # (its block index is constant in k), skipping the scratch + epilogue.
        acc = acc_ref if use_scratch else o_ref

        @pl.when(k == 0)
        def _():
            acc[...] = part

        @pl.when(k > 0)
        def _():
            acc[...] += part

        if use_scratch or has_bias:
            @pl.when(k == pl.num_programs(2) - 1)
            def _():
                res = acc[...]
                if has_bias:
                    res = res + b_ref[...].astype(jnp.float32)
                o_ref[...] = res.astype(o_ref.dtype)

    if has_bias and use_scratch:
        def kernel(x_ref, w_ref, b_ref, o_ref, acc_ref):
            body(x_ref, w_ref, b_ref, o_ref, acc_ref)
    elif has_bias:
        def kernel(x_ref, w_ref, b_ref, o_ref):
            body(x_ref, w_ref, b_ref, o_ref, None)
    elif use_scratch:
        def kernel(x_ref, w_ref, o_ref, acc_ref):
            body(x_ref, w_ref, None, o_ref, acc_ref)
    else:
        def kernel(x_ref, w_ref, o_ref):
            body(x_ref, w_ref, None, o_ref, None)
    return kernel


def _pick_tiles(M, K, N, sub, budget, footprint, tm, tn, tk):
    """Choose (8,128)-legal tiles that avoid padding whenever possible."""
    # ---- N / tn: full extent, else largest 128-multiple divisor <= 512 ----
    if tn is None:
        if N <= 1024:
            tn = N
        elif N % 128 == 0:
            tn = 128
            for c in range(512, 0, -128):
                if N % c == 0:
                    tn = c
                    break
        else:
            steps = -(-N // 512)
            tn = _round_up(-(-N // steps), 128)
    # ---- K / tk: full extent (single K step), else divisor, else pad ----
    if tk is None:
        if K <= 2048:
            tk = K
        elif K % 128 == 0:
            tk = 128
            for c in range(2048, 0, -128):
                if K % c == 0:
                    tk = c
                    break
        else:
            steps = -(-K // 2048)
            tk = _round_up(-(-K // steps), 128)
    # ---- M / tm: GEMV-like (small M) -> single fat tile ----
    if tm is None:
        if M <= 512:
            tm = _round_up(M, sub)
        else:
            steps = -(-M // 512)
            tm = _round_up(-(-M // steps), sub)

    # Clamp to the VMEM budget (also protects caller-supplied tiles on v7x).
    while footprint(tm, tn, tk) > budget and tk > 512 and tk % 256 == 0:
        tk //= 2
    while footprint(tm, tn, tk) > budget and tn > 256:
        tn = max(256, _round_up(tn // 2, 128))
    while footprint(tm, tn, tk) > budget and tm > sub:
        tm = max(sub, _round_up(tm // 2, sub))
    return tm, tn, tk


def linear_pallas(x, weight_t, bias=None, *, tm=None, tn=None, tk=None,
                  compute_dtype=None):
    """y = x @ weight_t + bias, with x of shape [..., in_dim].

    weight_t: (in_dim, out_dim)  (transpose of PyTorch's nn.Linear.weight)
    bias:     (out_dim,) or None
    compute_dtype: optional (e.g. jnp.bfloat16) to run the MXU in a narrower
                   dtype while keeping f32 accumulation.
    """
    in_dim, out_dim = weight_t.shape
    lead_shape = x.shape[:-1]
    M = math.prod(lead_shape) if lead_shape else 1
    x2d = x.reshape(M, in_dim)

    out_dtype = x.dtype
    x_isz = jnp.dtype(x.dtype).itemsize
    w_isz = jnp.dtype(weight_t.dtype).itemsize
    o_isz = jnp.dtype(out_dtype).itemsize
    b_isz = jnp.dtype(bias.dtype).itemsize if bias is not None else 0
    sub = _sublane(x.dtype)
    has_bias = bias is not None
    use_scratch = out_dtype != jnp.float32
    tn_user = tn is not None

    def footprint(tm_, tn_, tk_):
        f = 2 * (tm_ * tk_ * x_isz + tk_ * tn_ * w_isz)  # double-buffered x/W
        f += 2 * tm_ * tn_ * o_isz                        # output tile
        if has_bias:
            f += 2 * tn_ * b_isz
        if use_scratch:
            f += tm_ * tn_ * 4                            # f32 accumulator
        return f

    vmem_cap = _vmem_capacity_bytes()
    # ~45% of physical VMEM for the tile working set: ~28 MiB on v7x
    # (64 MiB/TC), ~56 MiB on v5e/v6e (128 MiB).
    budget = min(56 * 1024 * 1024, int(vmem_cap * 0.45))

    tm, tn, tk = _pick_tiles(M, in_dim, out_dim, sub, budget, footprint,
                             tm, tn, tk)

    # v7x has 2 TensorCores: make sure the parallel (i, j) axes have >= 2
    # steps when the whole problem would otherwise be one output tile.
    # Splitting tn keeps total weight-streaming traffic unchanged.
    if (not tn_user
            and (_round_up(M, tm) // tm) * (_round_up(out_dim, tn) // tn) == 1
            and tn >= 256 and (tn // 2) % 128 == 0):
        tn //= 2

    m_pad = _round_up(M, tm)
    k_pad = _round_up(in_dim, tk)
    n_pad = _round_up(out_dim, tn)

    # Tile selection avoids padding for typical dims (full-extent or exact
    # divisors); pad only when unavoidable.
    if (m_pad, k_pad) != (M, in_dim):
        x2d = jnp.pad(x2d, ((0, m_pad - M), (0, k_pad - in_dim)))
    w = weight_t
    if (k_pad, n_pad) != (in_dim, out_dim):
        # TODO(synk): for static weights, pre-pad once at parameter-init time
        # instead of per call (only hit on pathological non-128 dims).
        w = jnp.pad(w, ((0, k_pad - in_dim), (0, n_pad - out_dim)))

    grid = (m_pad // tm, n_pad // tn, k_pad // tk)

    fp = footprint(tm, tn, tk)
    compiler_params = pltpu.CompilerParams(
        dimension_semantics=("parallel", "parallel", "arbitrary"),
        vmem_limit_bytes=int(min(int(vmem_cap * 0.9),
                                 max(2 * fp + (4 << 20), 32 << 20))),
    )
    cost = pl.CostEstimate(
        flops=2 * M * in_dim * out_dim,
        transcendentals=0,
        bytes_accessed=(M * in_dim * x_isz * (n_pad // tn)       # x re-streams per j
                        + in_dim * out_dim * w_isz * (m_pad // tm)  # W re-streams per i
                        + M * out_dim * o_isz),
    )

    in_specs = [
        pl.BlockSpec((tm, tk), lambda i, j, k: (i, k)),   # x tile
        pl.BlockSpec((tk, tn), lambda i, j, k: (k, j)),   # W tile
    ]
    args = [x2d, w]
    if has_bias:
        b2d = bias.reshape(1, out_dim)
        if n_pad != out_dim:
            b2d = jnp.pad(b2d, ((0, 0), (0, n_pad - out_dim)))
        in_specs.append(pl.BlockSpec((1, tn), lambda i, j, k: (0, j)))
        args.append(b2d)

    scratch = [pltpu.VMEM((tm, tn), jnp.float32)] if use_scratch else []
    kernel = _make_kernel(has_bias, use_scratch, compute_dtype)

    out = pl.pallas_call(
        kernel,
        out_shape=jax.ShapeDtypeStruct((m_pad, n_pad), out_dtype),
        grid_spec=pltpu.PrefetchScalarGridSpec(
            num_scalar_prefetch=0,
            grid=grid,
            in_specs=in_specs,
            out_specs=pl.BlockSpec((tm, tn), lambda i, j, k: (i, j)),
            scratch_shapes=scratch,
        ),
        compiler_params=compiler_params,
        cost_estimate=cost,
    )(*args)

    if (m_pad, n_pad) != (M, out_dim):
        out = out[:M, :out_dim]
    return out.reshape(*lead_shape, out_dim)


def init_linear_params(key, in_dim, out_dim, bias=True, w_init="linear",
                       dtype=jnp.float32):
    """Deterministic xavier_uniform init matching the PyTorch module."""
    gain = 1.0  # nn.init.calculate_gain('linear') == 1.0
    bound = gain * math.sqrt(6.0 / (in_dim + out_dim))
    k_w, k_b = jax.random.split(key)
    # PyTorch weight is (out_dim, in_dim); we store its transpose (in_dim, out_dim).
    w_pt = jax.random.uniform(k_w, (out_dim, in_dim), dtype=dtype,
                              minval=-bound, maxval=bound)
    weight_t = w_pt.T
    if bias:
        # nn.Linear default bias init: U(-1/sqrt(in_dim), 1/sqrt(in_dim))
        b_bound = 1.0 / math.sqrt(in_dim)
        b = jax.random.uniform(k_b, (out_dim,), dtype=dtype,
                               minval=-b_bound, maxval=b_bound)
    else:
        b = None
    return weight_t, b


if __name__ == "__main__":
    key = jax.random.PRNGKey(0)
    k_x1, k_p1, k_x2, k_p2, k_x3, k_p3 = jax.random.split(key, 6)

    # Case 1: tiny shapes typical for the module (bias=True, f32) — full-extent
    # tiles, no padding, direct-to-output f32 accumulation.
    batch, seq, in_dim, out_dim = 2, 8, 32, 32
    x1 = jax.random.normal(k_x1, (batch, seq, in_dim), dtype=jnp.float32)
    w1, b1 = init_linear_params(k_p1, in_dim, out_dim, bias=True)
    y1 = jax.block_until_ready(linear_pallas(x1, w1, b1))
    y1_ref = x1 @ w1 + b1
    assert y1.shape == (batch, seq, out_dim)
    assert jnp.allclose(y1, y1_ref, atol=1e-5, rtol=1e-5)

    # Case 2: bias-free path, multi-step K reduction (tk=128 over K=256) and a
    # non-128 output dim handled with a full-extent tn (no pad / no slice).
    B2, S2, K2, N2 = 2, 96, 256, 160
    x2 = jax.random.normal(k_x2, (B2, S2, K2), dtype=jnp.float32)
    w2, _ = init_linear_params(k_p2, K2, N2, bias=False)
    y2 = jax.block_until_ready(linear_pallas(x2, w2, None, tk=128))
    y2_ref = x2 @ w2
    assert y2.shape == (B2, S2, N2)
    assert jnp.allclose(y2, y2_ref, atol=1e-4, rtol=1e-4)

    # Case 3: bf16 inputs/params — exercises dtype-aware sublane rounding
    # (tm multiple of 16, small-M padding of x only) and the f32 scratch
    # accumulator path with a bf16 output.
    B3, S3, K3, N3 = 2, 9, 64, 128
    x3 = jax.random.normal(k_x3, (B3, S3, K3), dtype=jnp.bfloat16)
    w3, b3 = init_linear_params(k_p3, K3, N3, bias=True, dtype=jnp.bfloat16)
    y3 = jax.block_until_ready(linear_pallas(x3, w3, b3))
    y3_ref = (x3.astype(jnp.float32) @ w3.astype(jnp.float32)
              + b3.astype(jnp.float32))
    assert y3.shape == (B3, S3, N3)
    assert jnp.allclose(y3.astype(jnp.float32), y3_ref, atol=5e-2, rtol=5e-2)

    print("KERNEL_OK")
</pallas_src>

<mosaic_0001>
module attributes {stable_mosaic.version = 11 : i64} {
  func.func @kernel(%arg0: i32, %arg1: i32, %arg2: i32, %arg3: memref<16x32xf32, #tpu.memory_space<vmem>>, %arg4: memref<32x32xf32, #tpu.memory_space<vmem>>, %arg5: memref<1x32xf32, #tpu.memory_space<vmem>>, %arg6: memref<16x32xf32, #tpu.memory_space<vmem>>) attributes {dimension_semantics = [#tpu.dimension_semantics<parallel>, #tpu.dimension_semantics<parallel>, #tpu.dimension_semantics<arbitrary>], iteration_bounds = array<i64: 1, 1, 1>, scalar_prefetch = 0 : i64, scratch_operands = 0 : i64, tpu.core_type = #tpu.core_type<tc>, window_params = [{transform_indices = @transform_0, window_bounds = array<i64: 16, 32>}, {transform_indices = @transform_1, window_bounds = array<i64: 32, 32>}, {transform_indices = @transform_2, window_bounds = array<i64: 1, 32>}, {transform_indices = @transform_3, window_bounds = array<i64: 16, 32>}]} {
    %c0 = arith.constant 0 : index
    %c0_0 = arith.constant 0 : index
    %0 = vector.load %arg3[%c0, %c0_0] : memref<16x32xf32, #tpu.memory_space<vmem>>, vector<16x32xf32>
    %c0_1 = arith.constant 0 : index
    %c0_2 = arith.constant 0 : index
    %1 = vector.load %arg4[%c0_1, %c0_2] : memref<32x32xf32, #tpu.memory_space<vmem>>, vector<32x32xf32>
    %cst = arith.constant dense<0.000000e+00> : vector<16x32xf32>
    %2 = tpu.matmul %0, %1, %cst {dimension_numbers = #tpu.dot_dimension_numbers<[1], [0], [0], [1], [0, 0, 1, 1], [], []>} : vector<16x32xf32>, vector<32x32xf32>, vector<16x32xf32> -> vector<16x32xf32>
    %c0_i32 = arith.constant 0 : i32
    %3 = arith.cmpi eq, %arg2, %c0_i32 : i32
    %4 = arith.extui %3 : i1 to i32
    %c0_i32_3 = arith.constant 0 : i32
    %5 = arith.cmpi ne, %4, %c0_i32_3 : i32
    scf.if %5 {
      %c0_8 = arith.constant 0 : index
      %c0_9 = arith.constant 0 : index
      %12 = vector.load %arg6[%c0_8, %c0_9] : memref<16x32xf32, #tpu.memory_space<vmem>>, vector<16x32xf32>
      tpu.vector_store %arg6[%c0_8, %c0_9], %2 {strides = array<i32>} : memref<16x32xf32, #tpu.memory_space<vmem>>, vector<16x32xf32>,
    } else {
    }
    %c0_i32_4 = arith.constant 0 : i32
    %6 = arith.cmpi sgt, %arg2, %c0_i32_4 : i32
    %7 = arith.extui %6 : i1 to i32
    %c0_i32_5 = arith.constant 0 : i32
    %8 = arith.cmpi ne, %7, %c0_i32_5 : i32
    scf.if %8 {
      %c0_8 = arith.constant 0 : index
      %c0_9 = arith.constant 0 : index
      %12 = vector.load %arg6[%c0_8, %c0_9] : memref<16x32xf32, #tpu.memory_space<vmem>>, vector<16x32xf32>
      %13 = arith.addf %12, %2 : vector<16x32xf32>
      %c0_10 = arith.constant 0 : index
      %c0_11 = arith.constant 0 : index
      %14 = vector.load %arg6[%c0_10, %c0_11] : memref<16x32xf32, #tpu.memory_space<vmem>>, vector<16x32xf32>
      tpu.vector_store %arg6[%c0_10, %c0_11], %13 {strides = array<i32>} : memref<16x32xf32, #tpu.memory_space<vmem>>, vector<16x32xf32>,
    } else {
    }
    %c0_i32_6 = arith.constant 0 : i32
    %9 = arith.cmpi eq, %arg2, %c0_i32_6 : i32
    %10 = arith.extui %9 : i1 to i32
    %c0_i32_7 = arith.constant 0 : i32
    %11 = arith.cmpi ne, %10, %c0_i32_7 : i32
    scf.if %11 {
      %c0_8 = arith.constant 0 : index
      %c0_9 = arith.constant 0 : index
      %12 = vector.load %arg6[%c0_8, %c0_9] : memref<16x32xf32, #tpu.memory_space<vmem>>, vector<16x32xf32>
      %c0_10 = arith.constant 0 : index
      %c0_11 = arith.constant 0 : index
      %13 = vector.load %arg5[%c0_10, %c0_11] : memref<1x32xf32, #tpu.memory_space<vmem>>, vector<1x32xf32>
      %14 = vector.broadcast %13 : vector<1x32xf32> to vector<16x32xf32>
      %15 = arith.addf %12, %14 : vector<16x32xf32>
      %c0_12 = arith.constant 0 : index
      %c0_13 = arith.constant 0 : index
      %16 = vector.load %arg6[%c0_12, %c0_13] : memref<16x32xf32, #tpu.memory_space<vmem>>, vector<16x32xf32>
      tpu.vector_store %arg6[%c0_12, %c0_13], %15 {strides = array<i32>} : memref<16x32xf32, #tpu.memory_space<vmem>>, vector<16x32xf32>,
    } else {
    }
    return
  }
  func.func @transform_0(%arg0: i32, %arg1: i32, %arg2: i32) -> (i32, i32) {
    %c0_i32 = arith.constant 0 : i32
    return %arg0, %arg2 : i32, i32
  }
  func.func @transform_1(%arg0: i32, %arg1: i32, %arg2: i32) -> (i32, i32) {
    %c0_i32 = arith.constant 0 : i32
    return %arg2, %arg1 : i32, i32
  }
  func.func @transform_2(%arg0: i32, %arg1: i32, %arg2: i32) -> (i32, i32) {
    %c0_i32 = arith.constant 0 : i32
    %c0_i32_0 = arith.constant 0 : i32
    return %c0_i32, %arg1 : i32, i32
  }
  func.func @transform_3(%arg0: i32, %arg1: i32, %arg2: i32) -> (i32, i32) {
    %c0_i32 = arith.constant 0 : i32
    return %arg0, %arg1 : i32, i32
  }
}

</mosaic_0001>

<bundles_post_ra>
// kernel: tpu_custom_call.1
= control target key start
LH: loop header
LB: loop body
LE: loop exit
PB: predicated region body
PF: predicated region fallthrough
CT: control target
= control target key end

     0   :  { %8 = vsyncpa [#allocation3], 0  ;;  %s324_s0 = inlined_call_operand.hbm [shape: f32[16,32], index: 0, kind: input, shape index: {}]   ;;  %s325_s1 = inlined_call_operand.hbm [shape: f32[32,32], index: 1, kind: input, shape index: {}]   ;;  %s326_s2 = inlined_call_operand.vmem [shape: f32[1,32], index: 2, kind: input, shape index: {}]   ;;  %s327_s3 = inlined_call_operand.hbm [shape: f32[16,32], index: 3, kind: output, shape index: {}]  }
   0x1   :  { %9 = vsyncpa [#allocation6], 0 }
   0x2   :  { %10 = vsyncpa [#allocation4], 0  ;;  %s272_s12 = smov [#allocation2]  }
   0x3   :  { %s16_s13 = sshll.u32 %s272_s12, 4  ;;  %s17_s13 = int_to_ptr.vmem [resolvable:$true] %s16_s13 }
   0x4   :  { %s214_s14 = scalar_lea.vmem %s17_s13, 256  ;;  %p219_p1 = scmp.lt.s32.totalorder %s17_s13, %s17_s13 }
   0x5   :  { %p215_p0 = scmp.ne.s32.totalorder %s17_s13, %s214_s14  ;;  %p220_p2 = scmp.lt.s32.totalorder %s214_s14, %s214_s14 }
   0x7   :  { %p221_p3 = por %p220_p2, %p219_p1 }
   0x9   :  { %p222_p4 = pnand %p221_p3, %p215_p0 }
   0xb   :  { %225 = shalt.err (!%p222_p4)
}
   0xc   :  { %s273_s15 = smov 128   ;;  %s274_s16 = smov 8  }
   0xd   :  { %22 = dma.hbm_to_vmem [thread:$0]  %s324_s0, 256, %s17_s13, [#allocation3], %s273_s15, %s273_s15, %s274_s16  }
   0xe   :  { %s275_s19 = smov [#allocation5]  }
   0xf   :  { %s28_s20 = sshll.u32 %s275_s19, 4  ;;  %s29_s20 = int_to_ptr.vmem [resolvable:$true] %s28_s20 }
  0x10   :  { %s234_s21 = scalar_lea.vmem %s29_s20, 512  ;;  %p239_p6 = scmp.lt.s32.totalorder %s29_s20, %s29_s20 }
  0x11   :  { %p235_p5 = scmp.ne.s32.totalorder %s29_s20, %s234_s21  ;;  %p240_p7 = scmp.lt.s32.totalorder %s234_s21, %s234_s21 }
  0x13   :  { %p241_p8 = por %p240_p7, %p239_p6 }
  0x15   :  { %p242_p9 = pnand %p241_p8, %p235_p5 }
  0x17   :  { %245 = shalt.err (!%p242_p9)
}
  0x18   :  { %34 = dma.hbm_to_vmem [thread:$0]  %s325_s1, 512, %s29_s20, [#allocation6], %s273_s15, %s273_s15, %s274_s16  }
  0x19   :  { %266 = dma.done.wait [#allocation3], 256  }
  0x1a   :  { %267 = vsyncadd [#allocation3], 4294967040 }
  0x1b   :  { %268 = dma.done.wait [#allocation6], 512  }
  0x1c   :  { %269 = vsyncadd [#allocation6], 4294966784  ;;  %vm49_vm0 = vcmask 261120   ;;  %v48_v0 = vld [vmem:[#allocation5 + $0x18] sm:$0xff]  ;;  %v47_v1 = vld [vmem:[#allocation5 + $0x10] sm:$0xff]  ;;  %s276_s24 = smov [#allocation7]  }
  0x1d   :  { %190 = vmatprep.subr.mxu0 %v48_v0  ;;  %v43_v2 = vld [vmem:[#allocation2] sm:$0xff]  ;;  %v46_v3 = vld [vmem:[#allocation5 + $0x8] sm:$0xff]  ;;  %v45_v4 = vld [vmem:[#allocation5] sm:$0xff]  ;;  %s168_s25 = sshll.u32 %s276_s24, 4  ;;  %s169_s25 = int_to_ptr.vmem [resolvable:$true] %s168_s25 }
  0x1e   :  { %191 = vmatpush3.msra.mxu0 %v48_v0  ;;  %198 = vmatprep.mubr.msk.f32.mxu0 %vm49_vm0, %v43_v2  ;;  %v44_v5 = vld [vmem:[#allocation2 + $0x8] sm:$0xff]  ;;  %v183_v8 = vld [vmem:[%s326_s2] ss:$0 sm:$0xff]  ;;  %s246_s26 = scalar_lea.vmem %s169_s25, 256  ;;  %p251_p11 = scmp.lt.s32.totalorder %s169_s25, %s169_s25 }
  0x1f   :  { %192 = vmatprep.subr.mxu0 %v47_v1  ;;  %p247_p10 = scmp.ne.s32.totalorder %s169_s25, %s246_s26  ;;  %p252_p12 = scmp.lt.s32.totalorder %s246_s26, %s246_s26 }
  0x20   :  { %193 = vmatpush3.msra.mxu0 %v47_v1 }
  0x21   :  { %194 = vmatprep.subr.mxu0 %v46_v3  ;;  %p253_p13 = por %p252_p12, %p251_p11 }
  0x22   :  { %195 = vmatpush3.msra.mxu0 %v46_v3 }
  0x23   :  { %196 = vmatprep.subr.mxu0 %v45_v4  ;;  %p254_p0 = pnand %p253_p13, %p247_p10 }
  0x24   :  { %197 = vmatpush3.msra.mxu0 %v45_v4 }
  0x25   :  { %199 = vmatmul.mubr.msk.f32.vlgmr.msra.gmra.mxu0 %vm49_vm0, %v44_v5 }
  0xe5   :  { %v200_v6 = vpop.f32.mrf.mxu0 }
  0xe6   :  { %136 = vst.msk [vmem:[#allocation7 + $0x8] sm:$0xff] %vm49_vm0, %v200_v6 }
  0xe7   :  { %v122_v7 = vpop.f32.mrf.mxu0 }
  0xe8   :  { %135 = vst.msk [vmem:[#allocation7] sm:$0xff] %vm49_vm0, %v122_v7 }
  0xed   :  { %v151_v9 = vld [vmem:[#allocation7 + $0x8] sm:$0xff] }
  0xee   :  { %v160_v10 = vadd.f32 %v183_v8, %v151_v9 }
  0xef   :  { %v150_v11 = vld [vmem:[#allocation7] sm:$0xff] }
  0xf0   :  { %v159_v12 = vadd.f32 %v183_v8, %v150_v11  ;;  %162 = vst.msk [vmem:[#allocation7 + $0x8] sm:$0xff] %vm49_vm0, %v160_v10 }
  0xf2   :  { %161 = vst.msk [vmem:[#allocation7] sm:$0xff] %vm49_vm0, %v159_v12 }
  0xf3   :  { %257 = shalt.err (!%p254_p0)
}
  0xf4   :  { %174 = dma.vmem_to_hbm [thread:$0]  %s169_s25, 256, %s327_s3, [#allocation4], %s273_s15, %s273_s15, %s274_s16  }
  0xf5   :  { %270 = dma.done.wait [#allocation4], 256  }
  0xf6   :  { %271 = vsyncadd [#allocation4], 4294967040 }
  0xf7   :  { %178 = vsyncpa [#allocation3], 1 }
  0xf8   :  { %179 = vsyncpa [#allocation6], 1 }
  0xf9   :  { %180 = vsyncpa [#allocation4], 1 }

</bundles_post_ra>
